<compile_context>
chip_gen: v7x
topology: tpu7x:2x2x1
jax: 0.10.0
libtpu: 0.0.40
codegen_flags: <defaults>
</compile_context>

<pallas_src>
import functools

import jax
import jax.numpy as jnp
from jax.experimental import pallas as pl
from jax.experimental.pallas import tpu as pltpu


def rnn_fc_kernel(x_ref, wih_ref, whh_ref, b_ref, wfc_ref, bfc_ref, o_ref, *, T, B):
    """tanh-RNN recurrence over time + final FC, all inside one kernel.

    x_ref   : (T*B, H)  time-major input, flattened (timestep t = rows t*B..t*B+B-1)
    wih_ref : (H, H)    W_ih^T
    whh_ref : (H, H)    W_hh^T
    b_ref   : (1, H)    b_ih + b_hh
    wfc_ref : (H, O)    W_fc^T
    bfc_ref : (1, O)    b_fc
    o_ref   : (B, O)    output
    """
    H = wih_ref.shape[0]

    # (1)+(4) Input projection for ALL timesteps in a single batched matmul,
    # bias folded in once. Independent of the hidden state -> off the serial
    # recurrence chain.
    pre = (jnp.dot(x_ref[...], wih_ref[...], preferred_element_type=jnp.float32)
           + b_ref[...])                                   # (T*B, H)

    # Hoist the recurrent weight load out of the loop.
    whh = whh_ref[...]                                      # (H, H)

    # (2)+(3) Fully unrolled recurrence; h lives in vregs, never round-trips
    # through VMEM. Each step is one MXU matmul + add + tanh.
    h = jnp.zeros((B, H), jnp.float32)
    for t in range(T):
        h = jnp.tanh(pre[t * B:(t + 1) * B, :]
                     + jnp.dot(h, whh, preferred_element_type=jnp.float32))
    # TODO(synk): for large T, switch to lax.fori_loop(..., unroll=k) with the
    # precomputed projection staged through a (time-chunked) VMEM scratch /
    # grid over time; for large B on v7x, add a grid over batch halves with
    # dimension_semantics=("parallel",).

    # Final FC on the last hidden state; b_fc folded into the epilogue.
    o_ref[...] = (jnp.dot(h, wfc_ref[...], preferred_element_type=jnp.float32)
                  + bfc_ref[...])


def rnn_forward(x, w_ih, w_hh, b_ih, b_hh, w_fc, b_fc):
    """x: (B, T, H) float32, batch-first like PyTorch. Returns (B, O) float32."""
    B, T, H = x.shape
    O = w_fc.shape[0]

    # Pad batch to a sublane multiple so every per-timestep slice of the
    # precomputed projection is tile-aligned. Rows are independent throughout
    # (matmuls + elementwise), so zero-padded rows never affect real ones.
    Bp = ((B + 7) // 8) * 8
    x32 = x.astype(jnp.float32)
    if Bp != B:
        x32 = jnp.pad(x32, ((0, Bp - B), (0, 0), (0, 0)))

    # Layout plumbing outside the kernel: time-major, flatten (T, Bp, H) -> (T*Bp, H).
    x_tm = jnp.transpose(x32, (1, 0, 2)).reshape(T * Bp, H)

    wih_t = w_ih.T.astype(jnp.float32)                       # (H, H)
    whh_t = w_hh.T.astype(jnp.float32)                       # (H, H)
    wfc_t = w_fc.T.astype(jnp.float32)                       # (H, O)
    b = (b_ih + b_hh).reshape(1, H).astype(jnp.float32)      # (1, H)
    bfc = b_fc.reshape(1, O).astype(jnp.float32)             # (1, O)

    vmem = pl.BlockSpec(memory_space=pltpu.MemorySpace.VMEM)
    out = pl.pallas_call(
        functools.partial(rnn_fc_kernel, T=T, B=Bp),
        out_shape=jax.ShapeDtypeStruct((Bp, O), jnp.float32),
        in_specs=[vmem] * 6,
        out_specs=vmem,
    )(x_tm, wih_t, whh_t, b, wfc_t, bfc)
    return out[:B]


def rnn_forward_ref(x, w_ih, w_hh, b_ih, b_hh, w_fc, b_fc):
    """Pure-JAX reference mirroring torch nn.RNN(tanh, batch_first) + Linear."""
    B, T, H = x.shape
    h = jnp.zeros((B, H), jnp.float32)
    for t in range(T):
        h = jnp.tanh(x[:, t, :] @ w_ih.T + b_ih + h @ w_hh.T + b_hh)
    return h @ w_fc.T + b_fc


if __name__ == "__main__":
    # Small shapes consistent with the module: method='rnn' so input feature
    # dim == n_hidden1.
    B, T = 4, 8
    n_hidden1 = 32
    n_outputs = 16

    key = jax.random.PRNGKey(0)
    ks = jax.random.split(key, 8)
    bound = 1.0 / jnp.sqrt(n_hidden1)

    # Parameter shapes mirror torch: rnn.weight_ih_l0 (H, H), rnn.weight_hh_l0 (H, H),
    # rnn.bias_ih_l0 (H,), rnn.bias_hh_l0 (H,), fc.weight (O, H), fc.bias (O,)
    w_ih = jax.random.uniform(ks[0], (n_hidden1, n_hidden1), jnp.float32, -bound, bound)
    w_hh = jax.random.uniform(ks[1], (n_hidden1, n_hidden1), jnp.float32, -bound, bound)
    b_ih = jax.random.uniform(ks[2], (n_hidden1,), jnp.float32, -bound, bound)
    b_hh = jax.random.uniform(ks[3], (n_hidden1,), jnp.float32, -bound, bound)
    w_fc = jax.random.uniform(ks[4], (n_outputs, n_hidden1), jnp.float32, -bound, bound)
    b_fc = jax.random.uniform(ks[5], (n_outputs,), jnp.float32, -bound, bound)

    x = jax.random.normal(ks[6], (B, T, n_hidden1), jnp.float32)

    out = rnn_forward(x, w_ih, w_hh, b_ih, b_hh, w_fc, b_fc)
    out = jax.block_until_ready(out)

    ref = rnn_forward_ref(x, w_ih, w_hh, b_ih, b_hh, w_fc, b_fc)
    assert out.shape == (B, n_outputs)
    assert jnp.allclose(out, ref, atol=1e-5, rtol=1e-5), "mismatch vs reference"

    print("KERNEL_OK")
</pallas_src>

<mosaic_0001>
module attributes {stable_mosaic.version = 11 : i64} {
  func.func @rnn_fc_kernel(%arg0: memref<64x32xf32, #tpu.memory_space<vmem>>, %arg1: memref<32x32xf32, #tpu.memory_space<vmem>>, %arg2: memref<32x32xf32, #tpu.memory_space<vmem>>, %arg3: memref<1x32xf32, #tpu.memory_space<vmem>>, %arg4: memref<32x16xf32, #tpu.memory_space<vmem>>, %arg5: memref<1x16xf32, #tpu.memory_space<vmem>>, %arg6: memref<8x16xf32, #tpu.memory_space<vmem>>) attributes {dimension_semantics = [], scalar_prefetch = 0 : i64, scratch_operands = 0 : i64, tpu.core_type = #tpu.core_type<tc>} {
    %c0 = arith.constant 0 : index
    %c0_0 = arith.constant 0 : index
    %0 = vector.load %arg0[%c0, %c0_0] : memref<64x32xf32, #tpu.memory_space<vmem>>, vector<64x32xf32>
    %c0_1 = arith.constant 0 : index
    %c0_2 = arith.constant 0 : index
    %1 = vector.load %arg1[%c0_1, %c0_2] : memref<32x32xf32, #tpu.memory_space<vmem>>, vector<32x32xf32>
    %cst = arith.constant dense<0.000000e+00> : vector<64x32xf32>
    %2 = tpu.matmul %0, %1, %cst {dimension_numbers = #tpu.dot_dimension_numbers<[1], [0], [0], [1], [0, 0, 1, 1], [], []>} : vector<64x32xf32>, vector<32x32xf32>, vector<64x32xf32> -> vector<64x32xf32>
    %c0_3 = arith.constant 0 : index
    %c0_4 = arith.constant 0 : index
    %3 = vector.load %arg3[%c0_3, %c0_4] : memref<1x32xf32, #tpu.memory_space<vmem>>, vector<1x32xf32>
    %4 = vector.broadcast %3 : vector<1x32xf32> to vector<64x32xf32>
    %5 = arith.addf %2, %4 : vector<64x32xf32>
    %c0_5 = arith.constant 0 : index
    %c0_6 = arith.constant 0 : index
    %6 = vector.load %arg2[%c0_5, %c0_6] : memref<32x32xf32, #tpu.memory_space<vmem>>, vector<32x32xf32>
    %cst_7 = arith.constant 0.000000e+00 : f32
    %7 = vector.broadcast %cst_7 : f32 to vector<8x32xf32>
    %8 = vector.extract_strided_slice %5 {offsets = [0, 0], sizes = [8, 32], strides = [1, 1]} : vector<64x32xf32> to vector<8x32xf32>
    %cst_8 = arith.constant dense<0.000000e+00> : vector<8x32xf32>
    %9 = tpu.matmul %7, %6, %cst_8 {dimension_numbers = #tpu.dot_dimension_numbers<[1], [0], [0], [1], [0, 0, 1, 1], [], []>} : vector<8x32xf32>, vector<32x32xf32>, vector<8x32xf32> -> vector<8x32xf32>
    %10 = arith.addf %8, %9 : vector<8x32xf32>
    %11 = math.tanh %10 : vector<8x32xf32>
    %12 = vector.extract_strided_slice %5 {offsets = [8, 0], sizes = [8, 32], strides = [1, 1]} : vector<64x32xf32> to vector<8x32xf32>
    %cst_9 = arith.constant dense<0.000000e+00> : vector<8x32xf32>
    %13 = tpu.matmul %11, %6, %cst_9 {dimension_numbers = #tpu.dot_dimension_numbers<[1], [0], [0], [1], [0, 0, 1, 1], [], []>} : vector<8x32xf32>, vector<32x32xf32>, vector<8x32xf32> -> vector<8x32xf32>
    %14 = arith.addf %12, %13 : vector<8x32xf32>
    %15 = math.tanh %14 : vector<8x32xf32>
    %16 = vector.extract_strided_slice %5 {offsets = [16, 0], sizes = [8, 32], strides = [1, 1]} : vector<64x32xf32> to vector<8x32xf32>
    %cst_10 = arith.constant dense<0.000000e+00> : vector<8x32xf32>
    %17 = tpu.matmul %15, %6, %cst_10 {dimension_numbers = #tpu.dot_dimension_numbers<[1], [0], [0], [1], [0, 0, 1, 1], [], []>} : vector<8x32xf32>, vector<32x32xf32>, vector<8x32xf32> -> vector<8x32xf32>
    %18 = arith.addf %16, %17 : vector<8x32xf32>
    %19 = math.tanh %18 : vector<8x32xf32>
    %20 = vector.extract_strided_slice %5 {offsets = [24, 0], sizes = [8, 32], strides = [1, 1]} : vector<64x32xf32> to vector<8x32xf32>
    %cst_11 = arith.constant dense<0.000000e+00> : vector<8x32xf32>
    %21 = tpu.matmul %19, %6, %cst_11 {dimension_numbers = #tpu.dot_dimension_numbers<[1], [0], [0], [1], [0, 0, 1, 1], [], []>} : vector<8x32xf32>, vector<32x32xf32>, vector<8x32xf32> -> vector<8x32xf32>
    %22 = arith.addf %20, %21 : vector<8x32xf32>
    %23 = math.tanh %22 : vector<8x32xf32>
    %24 = vector.extract_strided_slice %5 {offsets = [32, 0], sizes = [8, 32], strides = [1, 1]} : vector<64x32xf32> to vector<8x32xf32>
    %cst_12 = arith.constant dense<0.000000e+00> : vector<8x32xf32>
    %25 = tpu.matmul %23, %6, %cst_12 {dimension_numbers = #tpu.dot_dimension_numbers<[1], [0], [0], [1], [0, 0, 1, 1], [], []>} : vector<8x32xf32>, vector<32x32xf32>, vector<8x32xf32> -> vector<8x32xf32>
    %26 = arith.addf %24, %25 : vector<8x32xf32>
    %27 = math.tanh %26 : vector<8x32xf32>
    %28 = vector.extract_strided_slice %5 {offsets = [40, 0], sizes = [8, 32], strides = [1, 1]} : vector<64x32xf32> to vector<8x32xf32>
    %cst_13 = arith.constant dense<0.000000e+00> : vector<8x32xf32>
    %29 = tpu.matmul %27, %6, %cst_13 {dimension_numbers = #tpu.dot_dimension_numbers<[1], [0], [0], [1], [0, 0, 1, 1], [], []>} : vector<8x32xf32>, vector<32x32xf32>, vector<8x32xf32> -> vector<8x32xf32>
    %30 = arith.addf %28, %29 : vector<8x32xf32>
    %31 = math.tanh %30 : vector<8x32xf32>
    %32 = vector.extract_strided_slice %5 {offsets = [48, 0], sizes = [8, 32], strides = [1, 1]} : vector<64x32xf32> to vector<8x32xf32>
    %cst_14 = arith.constant dense<0.000000e+00> : vector<8x32xf32>
    %33 = tpu.matmul %31, %6, %cst_14 {dimension_numbers = #tpu.dot_dimension_numbers<[1], [0], [0], [1], [0, 0, 1, 1], [], []>} : vector<8x32xf32>, vector<32x32xf32>, vector<8x32xf32> -> vector<8x32xf32>
    %34 = arith.addf %32, %33 : vector<8x32xf32>
    %35 = math.tanh %34 : vector<8x32xf32>
    %36 = vector.extract_strided_slice %5 {offsets = [56, 0], sizes = [8, 32], strides = [1, 1]} : vector<64x32xf32> to vector<8x32xf32>
    %cst_15 = arith.constant dense<0.000000e+00> : vector<8x32xf32>
    %37 = tpu.matmul %35, %6, %cst_15 {dimension_numbers = #tpu.dot_dimension_numbers<[1], [0], [0], [1], [0, 0, 1, 1], [], []>} : vector<8x32xf32>, vector<32x32xf32>, vector<8x32xf32> -> vector<8x32xf32>
    %38 = arith.addf %36, %37 : vector<8x32xf32>
    %39 = math.tanh %38 : vector<8x32xf32>
    %c0_16 = arith.constant 0 : index
    %c0_17 = arith.constant 0 : index
    %40 = vector.load %arg4[%c0_16, %c0_17] : memref<32x16xf32, #tpu.memory_space<vmem>>, vector<32x16xf32>
    %cst_18 = arith.constant dense<0.000000e+00> : vector<8x16xf32>
    %41 = tpu.matmul %39, %40, %cst_18 {dimension_numbers = #tpu.dot_dimension_numbers<[1], [0], [0], [1], [0, 0, 1, 1], [], []>} : vector<8x32xf32>, vector<32x16xf32>, vector<8x16xf32> -> vector<8x16xf32>
    %c0_19 = arith.constant 0 : index
    %c0_20 = arith.constant 0 : index
    %42 = vector.load %arg5[%c0_19, %c0_20] : memref<1x16xf32, #tpu.memory_space<vmem>>, vector<1x16xf32>
    %43 = vector.broadcast %42 : vector<1x16xf32> to vector<8x16xf32>
    %44 = arith.addf %41, %43 : vector<8x16xf32>
    %c0_21 = arith.constant 0 : index
    %c0_22 = arith.constant 0 : index
    %45 = vector.load %arg6[%c0_21, %c0_22] : memref<8x16xf32, #tpu.memory_space<vmem>>, vector<8x16xf32>
    tpu.vector_store %arg6[%c0_21, %c0_22], %44 {strides = array<i32>} : memref<8x16xf32, #tpu.memory_space<vmem>>, vector<8x16xf32>,
    return
  }
}

</mosaic_0001>

<bundles_post_ra>
// kernel: tpu_custom_call.1
= control target key start
LH: loop header
LB: loop body
LE: loop exit
PB: predicated region body
PF: predicated region fallthrough
CT: control target
= control target key end

     0   :  { %vm43_vm0 = vcmask 261120   ;;  %v1177_v4 = vmov 0.0|0.0   ;;  %vm1178_vm1 = vmmov 0   ;;  %v1179_v13 = vmov 0.0   ;;  %s1377_s0 = inlined_call_operand.vmem [shape: f32[64,32], index: 0, kind: input, shape index: {}]   ;;  %s1378_s1 = inlined_call_operand.vmem [shape: f32[32,32], index: 1, kind: input, shape index: {}]   ;;  %s1379_s2 = inlined_call_operand.vmem [shape: f32[32,32], index: 2, kind: input, shape index: {}]   ;;  %s1380_s3 = inlined_call_operand.vmem [shape: f32[1,32], index: 3, kind: input, shape index: {}]   ;;  %s1381_s4 = inlined_call_operand.vmem [shape: f32[32,16], index: 4, kind: input, shape index: {}]   ;;  %s1382_s5 = inlined_call_operand.vmem [shape: f32[1,16], index: 5, kind: input, shape index: {}]   ;;  %s1383_s6 = inlined_call_operand.hbm [shape: f32[8,16], index: 6, kind: output, shape index: {}]  }
   0x1   :  { %v32_v0 = vld [vmem:[%s1378_s1] sm:$0xff]  ;;  %v33_v1 = vld [vmem:[%s1378_s1 + $0x8] sm:$0xff]  ;;  %1079 = vmatprep.subr.bf16.mxu1 %v1177_v4  ;;  %v34_v6 = vld [vmem:[%s1378_s1 + $0x10] sm:$0xff]  ;;  %980 = vmatprep.mubr.msk.f32.mxu1 %vm1178_vm1, %v1179_v13 }
   0x2   :  { %v173_v2 = vld [vmem:[%s1379_s2] sm:$0xff]  ;;  %v1071_v3 = vpack.c.bf16 %v33_v1, %v32_v0  ;;  %v174_v5 = vld [vmem:[%s1379_s2 + $0x8] sm:$0xff]  ;;  %v35_v7 = vld [vmem:[%s1378_s1 + $0x18] sm:$0xff] }
   0x3   :  { %v1235_v8 = vpack.c.bf16 %v174_v5, %v173_v2  ;;  %v1075_v9 = vpack.c.bf16 %v35_v7, %v34_v6  ;;  %v24_v10 = vld [vmem:[%s1377_s0] sm:$0xff]  ;;  %v175_v11 = vld [vmem:[%s1379_s2 + $0x10] sm:$0xff]  ;;  %v176_v12 = vld [vmem:[%s1379_s2 + $0x18] sm:$0xff] }
   0x4   :  { %1072 = vmatprep.subr.bf16.mxu0 %v1071_v3  ;;  %960 = vmatprep.mubr.msk.f32.mxu0 %vm43_vm0, %v24_v10 }
   0x5   :  { %11 = vsyncpa [#allocation3], 0  ;;  %1074 = vmatpush3.bf16.msra.mxu0 %v1071_v3  ;;  %1081 = vmatpush3.bf16.msra.mxu1 %v1235_v8  ;;  %v1250_v14 = vpack.c.bf16 %v176_v12, %v175_v11  ;;  %v25_v15 = vld [vmem:[%s1377_s0 + $0x8] sm:$0xff]  ;;  %v26_v16 = vld [vmem:[%s1377_s0 + $0x10] sm:$0xff]  ;;  %s1180_s13 = smov [#allocation2]   ;;  %vm861_vm2 = vcmask 130048  }
   0x6   :  { %1076 = vmatprep.subr.bf16.mxu0 %v1075_v9  ;;  %1082 = vmatprep.subr.bf16.mxu1 %v1177_v4  ;;  %v1278_v17 = vld [vmem:[%s1380_s3] ss:$0 sm:$0xff]  ;;  %v27_v25 = vld [vmem:[%s1377_s0 + $0x18] sm:$0xff]  ;;  %v29_v27 = vld [vmem:[%s1377_s0 + $0x28] sm:$0xff] }
   0x7   :  { %v28_v26 = vld [vmem:[%s1377_s0 + $0x20] sm:$0xff]  ;;  %v30_v28 = vld [vmem:[%s1377_s0 + $0x30] sm:$0xff]  ;;  %v31_v29 = vld [vmem:[%s1377_s0 + $0x38] sm:$0xff] }
   0x8   :  { %v777_v2 = vld [vmem:[%s1381_s4] sm:$0xff]  ;;  %v778_v3 = vld [vmem:[%s1381_s4 + $0x8] sm:$0xff]  ;;  %v779_v5 = vld [vmem:[%s1381_s4 + $0x10] sm:$0xff] }
   0x9   :  { %1078 = vmatpush3.bf16.msra.mxu0 %v1075_v9  ;;  %1084 = vmatpush3.bf16.msra.mxu1 %v1250_v14  ;;  %v1128_v6 = vpack.c.bf16 %v778_v3, %v777_v2  ;;  %v780_v7 = vld [vmem:[%s1381_s4 + $0x18] sm:$0xff]  ;;  %s869_s4 = sshll.u32 %s1180_s13, 4  ;;  %s870_s4 = int_to_ptr.vmem [resolvable:$true] %s869_s4 }
   0xa   :  { %1085 = vmatprep.subr.bf16.mxu1 %v1177_v4  ;;  %1091 = vmatprep.subr.bf16.mxu0 %v1177_v4  ;;  %s1153_s14 = scalar_lea.vmem %s870_s4, 128  ;;  %p1158_p1 = scmp.lt.s32.totalorder %s870_s4, %s870_s4 }
   0xb   :  { %p1154_p0 = scmp.ne.s32.totalorder %s870_s4, %s1153_s14  ;;  %p1159_p2 = scmp.lt.s32.totalorder %s1153_s14, %s1153_s14 }
   0xc   :  { %961 = vmatmul.mubr.msk.f32.vlgmr.msra.gmra.mrb[0].mxu0 %vm43_vm0, %v25_v15  ;;  %981 = vmatmul.mubr.f32.vlgmr.msra.gmra.mrb[0].mxu1 %v1179_v13 }
   0xd   :  { %1087 = vmatpush3.bf16.msra.mxu1 %v1235_v8  ;;  %991 = vmatprep.mubr.msk.f32.mxu1 %vm1178_vm1, %v1179_v13  ;;  %p1160_p3 = por %p1159_p2, %p1158_p1 }
   0xe   :  { %1088 = vmatprep.subr.bf16.mxu1 %v1177_v4  ;;  %1093 = vmatpush3.bf16.msra.mxu0 %v1235_v8 }
   0xf   :  { %1094 = vmatprep.subr.bf16.mxu0 %v1177_v4  ;;  %963 = vmatprep.mubr.msk.f32.mxu0 %vm43_vm0, %v26_v16  ;;  %p1161_p4 = pnand %p1160_p3, %p1154_p0 }
  0x10   :  { %964 = vmatmul.mubr.msk.f32.gmra.mrb[2].mxu0 %vm43_vm0, %v27_v25 }
  0x11   :  { %1090 = vmatpush3.bf16.msra.mxu1 %v1250_v14  ;;  %966 = vmatprep.mubr.msk.f32.mxu0 %vm43_vm0, %v28_v26 }
  0x12   :  { %1096 = vmatpush3.bf16.msra.mxu0 %v1250_v14  ;;  %1097 = vmatprep.subr.bf16.mxu1 %v1177_v4 }
  0x13   :  { %1103 = vmatprep.subr.bf16.mxu0 %v1177_v4 }
  0x14   :  { %967 = vmatmul.mubr.msk.f32.gmra.mrb[4].mxu0 %vm43_vm0, %v29_v27 }
  0x15   :  { %969 = vmatprep.mubr.msk.f32.mxu0 %vm43_vm0, %v30_v28 }
  0x18   :  { %970 = vmatmul.mubr.msk.f32.gmra.mrb[6].mxu0 %vm43_vm0, %v31_v29 }
  0x19   :  { %1002 = vmatprep.mubr.msk.f32.mxu0 %vm1178_vm1, %v1179_v13 }
  0xdf   :  { %v962_v18 = vpop.f32.mrb[0].mxu0  ;;  %v246_v19 = vpop.f32.mrb[0].mxu1 }
  0xe0   :  { %v134_v20 = vpop.f32.mrb[1].mxu0  ;;  %v982_v21 = vpop.f32.mrb[1].mxu1  ;;  %v140_v30 = vadd.f32 %v962_v18, %v1278_v17 }
  0xe1   :  { %v135_v22 = vadd.f32 %v1278_v17, %v134_v20 }
  0xe3   :  { %v250_v23 = vadd.f32 %v246_v19, %v135_v22  ;;  %v965_v35 = vpop.f32.mrb[2].mxu0 }
  0xe4   :  { %v144_v36 = vpop.f32.mrb[3].mxu0  ;;  %v150_v46 = vadd.f32 %v965_v35, %v1278_v17 }
  0xe5   :  { %1137 = vtanh.f32 %v250_v23  ;;  %v145_v41 = vadd.f32 %v1278_v17, %v144_v36 }
  0xe7   :  { %v968_v37 = vpop.f32.mrb[4].mxu0 }
  0xe8   :  { %v154_v38 = vpop.f32.mrb[5].mxu0  ;;  %v160_v56 = vadd.f32 %v968_v37, %v1278_v17 }
  0xe9   :  { %v155_v51 = vadd.f32 %v1278_v17, %v154_v38 }
  0xeb   :  { %v971_v39 = vpop.f32.mrb[6].mxu0 }
  0xec   :  { %v164_v40 = vpop.f32.mrb[7].mxu0  ;;  %v170_v9 = vadd.f32 %v971_v39, %v1278_v17 }
  0xed   :  { %v165_v61 = vadd.f32 %v1278_v17, %v164_v40 }
  0xef   :  { %v1138_v24 = vpop.eup %1137 }
  0xf0   :  { %992 = vmatmul.mubr.msk.f32.vlgmr.msra.gmra.mrb[2].mxu1 %vm43_vm0, %v1138_v24 }
  0xf1   :  { %1099 = vmatpush3.bf16.msra.mxu1 %v1235_v8  ;;  %1013 = vmatprep.mubr.msk.f32.mxu1 %vm1178_vm1, %v1179_v13 }
  0xf2   :  { %1100 = vmatprep.subr.bf16.mxu1 %v1177_v4 }
  0xf5   :  { %1102 = vmatpush3.bf16.msra.mxu1 %v1250_v14 }
  0xf6   :  { %1109 = vmatprep.subr.bf16.mxu1 %v1177_v4 }
 0x1c3   :  { %v321_v31 = vpop.f32.mrb[2].mxu1 }
 0x1c4   :  { %v325_v32 = vadd.f32 %v321_v31, %v140_v30  ;;  %v993_v33 = vpop.f32.mrb[3].mxu1 }
 0x1c6   :  { %1139 = vtanh.f32 %v325_v32 }
 0x1d0   :  { %v1140_v34 = vpop.eup %1139 }
 0x1d1   :  { %1003 = vmatmul.mubr.msk.f32.vlgmr.msra.gmra.mrb[8].mxu0 %vm43_vm0, %v1140_v34 }
 0x1d2   :  { %1105 = vmatpush3.bf16.msra.mxu0 %v1235_v8  ;;  %1024 = vmatprep.mubr.msk.f32.mxu0 %vm1178_vm1, %v1179_v13 }
 0x1d3   :  { %1106 = vmatprep.subr.bf16.mxu0 %v1177_v4 }
 0x1d6   :  { %1108 = vmatpush3.bf16.msra.mxu0 %v1250_v14 }
 0x1d7   :  { %1115 = vmatprep.subr.bf16.mxu0 %v1177_v4 }
 0x2a4   :  { %v396_v42 = vpop.f32.mrb[8].mxu0 }
 0x2a5   :  { %v400_v43 = vadd.f32 %v396_v42, %v145_v41  ;;  %v1004_v44 = vpop.f32.mrb[9].mxu0 }
 0x2a7   :  { %1141 = vtanh.f32 %v400_v43 }
 0x2b1   :  { %v1142_v45 = vpop.eup %1141 }
 0x2b2   :  { %1014 = vmatmul.mubr.msk.f32.vlgmr.msra.gmra.mrb[4].mxu1 %vm43_vm0, %v1142_v45 }
 0x2b3   :  { %1111 = vmatpush3.bf16.msra.mxu1 %v1235_v8  ;;  %1035 = vmatprep.mubr.msk.f32.mxu1 %vm1178_vm1, %v1179_v13 }
 0x2b4   :  { %1112 = vmatprep.subr.bf16.mxu1 %v1177_v4 }
 0x2b7   :  { %1114 = vmatpush3.bf16.msra.mxu1 %v1250_v14 }
 0x2b8   :  { %1121 = vmatprep.subr.bf16.mxu1 %v1177_v4 }
 0x385   :  { %v471_v47 = vpop.f32.mrb[4].mxu1 }
 0x386   :  { %v475_v48 = vadd.f32 %v471_v47, %v150_v46  ;;  %v1015_v49 = vpop.f32.mrb[5].mxu1 }
 0x388   :  { %1143 = vtanh.f32 %v475_v48 }
 0x392   :  { %v1144_v50 = vpop.eup %1143 }
 0x393   :  { %1025 = vmatmul.mubr.msk.f32.vlgmr.msra.gmra.mrb[10].mxu0 %vm43_vm0, %v1144_v50 }
 0x394   :  { %1117 = vmatpush3.bf16.msra.mxu0 %v1235_v8  ;;  %1046 = vmatprep.mubr.msk.f32.mxu0 %vm1178_vm1, %v1179_v13 }
 0x395   :  { %1118 = vmatprep.subr.bf16.mxu0 %v1177_v4 }
 0x398   :  { %1120 = vmatpush3.bf16.msra.mxu0 %v1250_v14 }
 0x399   :  { %1127 = vmatprep.subr.bf16.mxu0 %v1177_v4 }
 0x466   :  { %v546_v52 = vpop.f32.mrb[10].mxu0 }
 0x467   :  { %v550_v53 = vadd.f32 %v546_v52, %v155_v51  ;;  %v1026_v54 = vpop.f32.mrb[11].mxu0 }
 0x469   :  { %1145 = vtanh.f32 %v550_v53 }
 0x473   :  { %v1146_v55 = vpop.eup %1145 }
 0x474   :  { %1036 = vmatmul.mubr.msk.f32.vlgmr.msra.gmra.mrb[6].mxu1 %vm43_vm0, %v1146_v55 }
 0x475   :  { %1123 = vmatpush3.bf16.msra.mxu1 %v1235_v8  ;;  %1057 = vmatprep.mubr.msk.f32.mxu1 %vm1178_vm1, %v1179_v13  ;;  %v1131_v8 = vpack.c.bf16 %v780_v7, %v779_v5 }
 0x476   :  { %1124 = vmatprep.subr.bf16.mxu1 %v1177_v4 }
 0x479   :  { %1126 = vmatpush3.bf16.msra.mxu1 %v1250_v14  ;;  %v893_v14 = vld [vmem:[%s1382_s5] ss:$0 sm:$0xff] }
 0x547   :  { %v621_v57 = vpop.f32.mrb[6].mxu1 }
 0x548   :  { %v625_v58 = vadd.f32 %v621_v57, %v160_v56  ;;  %v1037_v59 = vpop.f32.mrb[7].mxu1 }
 0x54a   :  { %1147 = vtanh.f32 %v625_v58 }
 0x554   :  { %v1148_v60 = vpop.eup %1147 }
 0x555   :  { %1047 = vmatmul.mubr.msk.f32.vlgmr.msra.gmra.mrb[12].mxu0 %vm43_vm0, %v1148_v60 }
 0x556   :  { %1068 = vmatprep.mubr.msk.f32.mxu0 %vm1178_vm1, %v1179_v13  ;;  %1129 = vmatpush3.bf16.msra.mxu0 %v1128_v6 }
 0x557   :  { %1130 = vmatprep.subr.bf16.mxu0 %v1177_v4 }
 0x55a   :  { %1132 = vmatpush3.bf16.msra.mxu0 %v1131_v8 }
 0x628   :  { %v696_v62 = vpop.f32.mrb[12].mxu0 }
 0x629   :  { %v700_v63 = vadd.f32 %v696_v62, %v165_v61  ;;  %v1048_v0 = vpop.f32.mrb[13].mxu0 }
 0x62b   :  { %1149 = vtanh.f32 %v700_v63 }
 0x635   :  { %v1150_v1 = vpop.eup %1149 }
 0x636   :  { %1058 = vmatmul.mubr.msk.f32.vlgmr.msra.gmra.mrb[8].mxu1 %vm43_vm0, %v1150_v1 }
 0x709   :  { %v771_v10 = vpop.f32.mrb[8].mxu1 }
 0x70a   :  { %v775_v11 = vadd.f32 %v771_v10, %v170_v9  ;;  %v1059_v12 = vpop.f32.mrb[9].mxu1 }
 0x70c   :  { %1151 = vtanh.f32 %v775_v11 }
 0x716   :  { %v1152_v13 = vpop.eup %1151 }
 0x717   :  { %1069 = vmatmul.mubr.msk.f32.vlgmr.msra.gmra.mrb[14].mxu0 %vm43_vm0, %v1152_v13 }
 0x7ea   :  { %v857_v15 = vpop.f32.mrb[14].mxu0 }
 0x7eb   :  { %v858_v16 = vadd.f32 %v893_v14, %v857_v15  ;;  %v1070_v4 = vpop.f32.mrb[15].mxu0 }
 0x7ed   :  { %862 = vst.msk [vmem:[#allocation2] sm:$0xff] %vm861_vm2, %v858_v16 }
 0x7ee   :  { %1164 = shalt.err (!%p1161_p4)
}
 0x7ef   :  { %s1165_s15 = scalar_lea.hbm %s1383_s6, 128 }
 0x7f0   :  { %p1166_p5 = scmp.ne.s32.totalorder %s1383_s6, %s1165_s15  ;;  %p1169_p6 = scmp.lt.u32.totalorder %s1165_s15, %s1383_s6 }
 0x7f2   :  { %p1171_p7 = pnand %p1169_p6, %p1166_p5 }
 0x7f4   :  { %1174 = shalt.err (!%p1171_p7)
}
 0x7f5   :  { %872 = dma.vmem_to_hbm [thread:$0]  %s870_s4, 128, %s1383_s6, [#allocation3]  }
 0x7f6   :  { %1175 = dma.done.wait [#allocation3], 128  }
 0x7f7   :  { %1176 = vsyncadd [#allocation3], 4294967168 }
 0x7f8   :  { %876 = vsyncpa [#allocation3], 1 }

</bundles_post_ra>
